<compile_context>
chip_gen: v7x
topology: tpu7x:2x2x1
jax: 0.10.0
libtpu: 0.0.40
codegen_flags: <defaults>
</compile_context>

<pallas_src>
import functools
import math

import jax
import jax.numpy as jnp
from jax.experimental import pallas as pl
from jax.experimental.pallas import tpu as pltpu

# MXU operand dtype (f32 accumulation always kept via preferred_element_type).
MXU_DTYPE = jnp.bfloat16


def _pick(dim, target, floor=128):
    """Largest tile <= target (power-of-two descent, >= floor) dividing dim,
    else fall back to the full extent."""
    t = target
    while t >= floor:
        if dim % t == 0:
            return t
        t //= 2
    return dim


# ---------------------------------------------------------------------------
# Kernel 1: fused QKV projection  y = x @ W_qkv.T + b_qkv   (NT dot, tiled M/N/K)
# ---------------------------------------------------------------------------
def linear_nt_kernel(x_ref, w_ref, b_ref, o_ref, acc_ref):
    kk = pl.program_id(2)

    @pl.when(kk == 0)
    def _():
        acc_ref[...] = jnp.zeros_like(acc_ref)

    # NT matmul: contract dim 1 of x (tm, tk) with dim 1 of w (tn, tk).
    acc_ref[...] += jax.lax.dot_general(
        x_ref[...].astype(w_ref.dtype), w_ref[...],
        dimension_numbers=(((1,), (1,)), ((), ())),
        preferred_element_type=jnp.float32)

    @pl.when(kk == pl.num_programs(2) - 1)
    def _():
        o_ref[...] = (acc_ref[...] + b_ref[...]).astype(o_ref.dtype)


def linear_nt(x2d, w, b, *, out_dtype=None, tm=256, tn=512, tk=1024):
    """x2d: (M, K); w: (N, K) torch layout (bf16); b: (N,) f32  ->  (M, N)."""
    M, K = x2d.shape
    N = w.shape[0]
    tm, tn, tk = _pick(M, tm), _pick(N, tn), _pick(K, tk)
    out_dtype = x2d.dtype if out_dtype is None else out_dtype
    grid = (M // tm, N // tn, K // tk)
    return pl.pallas_call(
        linear_nt_kernel,
        out_shape=jax.ShapeDtypeStruct((M, N), out_dtype),
        grid=grid,
        in_specs=[
            pl.BlockSpec((tm, tk), lambda i, j, k: (i, k)),
            pl.BlockSpec((tn, tk), lambda i, j, k: (j, k)),
            pl.BlockSpec((1, tn), lambda i, j, k: (0, j)),
        ],
        out_specs=pl.BlockSpec((tm, tn), lambda i, j, k: (i, j)),
        scratch_shapes=[pltpu.VMEM((tm, tn), jnp.float32)],
        compiler_params=pltpu.CompilerParams(
            dimension_semantics=("parallel", "parallel", "arbitrary")),
    )(x2d, w, b.reshape(1, N).astype(jnp.float32))


# ---------------------------------------------------------------------------
# Kernel 2: multi-head attention on the fused bf16 QKV slab.
#   grid = (B, S // tq): one batch x one q-row tile per step; all heads handled
#   with a static loop (static lane slices), each head stored immediately.
#   Mask compare hoisted to the wrapper (keep / neg operands).
# ---------------------------------------------------------------------------
def attention_kernel(keep_ref, neg_ref, qkv_ref, ctx_ref, w_ref, *,
                     n_heads, d_model, tq):
    d_k = d_model // n_heads
    qt = pl.program_id(1)
    row0 = pl.multiple_of(qt * tq, tq)

    keep = keep_ref[0, 0]          # (mrows, S) f32, mrows in {1, tq}
    neg = neg_ref[0, 0]            # (mrows, S) f32

    for h in range(n_heads):       # static unroll; nothing kept live across heads
        q = qkv_ref[0, pl.ds(row0, tq), pl.ds(h * d_k, d_k)]            # (tq,d_k) bf16 (pre-scaled)
        k = qkv_ref[0, :, pl.ds(d_model + h * d_k, d_k)]                # (S, d_k) bf16
        v = qkv_ref[0, :, pl.ds(2 * d_model + h * d_k, d_k)]            # (S, d_k) bf16

        # scores = (q / sqrt(dk)) @ k^T   (scale pre-folded into W_q/b_q)
        scores = jax.lax.dot_general(
            q, k, dimension_numbers=(((1,), (1,)), ((), ())),
            preferred_element_type=jnp.float32)                          # (tq, S) f32

        # masked_fill(mask==0, -1e4): scores*keep + neg  (compare hoisted out)
        scores = scores * keep + neg

        # exact softmax (weights are part of the module's return contract)
        scores = scores - jnp.max(scores, axis=-1, keepdims=True)
        e = jnp.exp(scores)
        attn = e / jnp.sum(e, axis=-1, keepdims=True)

        w_ref[0, h] = attn                                               # (tq, S) f32
        ctx = jnp.dot(attn.astype(v.dtype), v,
                      preferred_element_type=jnp.float32)                # (tq, d_k)
        ctx_ref[0, :, pl.ds(h * d_k, d_k)] = ctx.astype(ctx_ref.dtype)


def multi_head_attention(qkv, keep, neg, n_heads, *, tq_target=256):
    B, S, D3 = qkv.shape
    D = D3 // 3
    Sm = keep.shape[2]
    tq = _pick(S, tq_target, floor=8)
    mrows = 1 if Sm == 1 else tq
    if Sm == 1:
        mask_map = lambda b, qt: (b, 0, 0, 0)
    else:
        mask_map = lambda b, qt: (b, 0, qt, 0)

    kernel = functools.partial(attention_kernel, n_heads=n_heads,
                               d_model=D, tq=tq)
    return pl.pallas_call(
        kernel,
        out_shape=(
            jax.ShapeDtypeStruct((B, S, D), qkv.dtype),              # bf16 ctx
            jax.ShapeDtypeStruct((B, n_heads, S, S), jnp.float32),   # attn weights
        ),
        grid=(B, S // tq),
        in_specs=[
            pl.BlockSpec((1, 1, mrows, S), mask_map),                # keep
            pl.BlockSpec((1, 1, mrows, S), mask_map),                # neg
            pl.BlockSpec((1, S, D3), lambda b, qt: (b, 0, 0)),       # qkv (const over qt)
        ],
        out_specs=(
            pl.BlockSpec((1, tq, D), lambda b, qt: (b, qt, 0)),
            pl.BlockSpec((1, n_heads, tq, S), lambda b, qt: (b, 0, qt, 0)),
        ),
        compiler_params=pltpu.CompilerParams(
            dimension_semantics=("parallel", "parallel")),
    )(keep, neg, qkv)


# ---------------------------------------------------------------------------
# Kernel 3: output projection (NT dot, K-tiled) + residual + LayerNorm fused.
#   N stays full (LayerNorm needs the whole d_model row at finalize).
# ---------------------------------------------------------------------------
def out_proj_ln_kernel(x_ref, w_ref, b_ref, res_ref, g_ref, beta_ref,
                       o_ref, acc_ref):
    kk = pl.program_id(1)

    @pl.when(kk == 0)
    def _():
        acc_ref[...] = jnp.zeros_like(acc_ref)

    acc_ref[...] += jax.lax.dot_general(
        x_ref[...].astype(w_ref.dtype), w_ref[...],
        dimension_numbers=(((1,), (1,)), ((), ())),
        preferred_element_type=jnp.float32)

    @pl.when(kk == pl.num_programs(1) - 1)
    def _():
        y = acc_ref[...] + b_ref[...] + res_ref[...].astype(jnp.float32)
        mean = jnp.mean(y, axis=-1, keepdims=True)
        var = jnp.mean(jnp.square(y - mean), axis=-1, keepdims=True)
        yn = (y - mean) * jax.lax.rsqrt(var + jnp.float32(1e-5))
        o_ref[...] = (yn * g_ref[...] + beta_ref[...]).astype(o_ref.dtype)


def out_proj_layernorm(x2d, w, b, res2d, gamma, beta, *, tm=256, tk=512):
    M, K = x2d.shape
    D = w.shape[0]
    tm, tk = _pick(M, tm), _pick(K, tk)
    grid = (M // tm, K // tk)
    return pl.pallas_call(
        out_proj_ln_kernel,
        out_shape=jax.ShapeDtypeStruct((M, D), res2d.dtype),
        grid=grid,
        in_specs=[
            pl.BlockSpec((tm, tk), lambda i, k: (i, k)),
            pl.BlockSpec((D, tk), lambda i, k: (0, k)),
            pl.BlockSpec((1, D), lambda i, k: (0, 0)),
            pl.BlockSpec((tm, D), lambda i, k: (i, 0)),
            pl.BlockSpec((1, D), lambda i, k: (0, 0)),
            pl.BlockSpec((1, D), lambda i, k: (0, 0)),
        ],
        out_specs=pl.BlockSpec((tm, D), lambda i, k: (i, 0)),
        scratch_shapes=[pltpu.VMEM((tm, D), jnp.float32)],
        compiler_params=pltpu.CompilerParams(
            dimension_semantics=("parallel", "arbitrary")),
    )(x2d, w, b.reshape(1, D).astype(jnp.float32), res2d,
      gamma.reshape(1, D).astype(jnp.float32),
      beta.reshape(1, D).astype(jnp.float32))


# ---------------------------------------------------------------------------
# Full SelfAttention forward
# ---------------------------------------------------------------------------
def self_attention_forward(x, mask, params, n_heads):
    B, S, D = x.shape
    d_k = D // n_heads
    scale = jnp.float32(1.0 / math.sqrt(d_k))

    # Stack torch-layout (out,in) Q/K/V weights, fold 1/sqrt(d_k) into Q,
    # pre-cast to bf16 (weights are re-read M//tm times by the kernel).
    w_qkv = jnp.concatenate(
        [params["W_q"] * scale, params["W_k"], params["W_v"]], axis=0
    ).astype(MXU_DTYPE)
    b_qkv = jnp.concatenate(
        [params["b_q"] * scale, params["b_k"], params["b_v"]], axis=0)   # f32

    x2d = x.reshape(B * S, D)
    qkv = linear_nt(x2d, w_qkv, b_qkv, out_dtype=MXU_DTYPE).reshape(B, S, 3 * D)

    # Normalize mask to [B,1,Sm,S] and hoist masked_fill operands out of the kernel.
    if mask is None:
        mask = jnp.ones((B, 1, 1, S), dtype=jnp.float32)
    elif mask.ndim == 2:
        mask = mask[:, None, None, :]
    elif mask.ndim == 3:
        mask = mask[:, None, :, :]
    mask = mask.astype(jnp.float32)
    keep = (mask != 0).astype(jnp.float32)                       # 1 where kept
    neg = jnp.where(mask == 0, jnp.float32(-10000.0), jnp.float32(0.0))

    ctx, attn_weights = multi_head_attention(qkv, keep, neg, n_heads)

    out2d = out_proj_layernorm(
        ctx.reshape(B * S, D), params["W_o"].astype(MXU_DTYPE),
        params["b_o"], x2d, params["ln_gamma"], params["ln_beta"])
    return out2d.reshape(B, S, D), attn_weights


# ---------------------------------------------------------------------------
# Pure-JAX reference (f32) for sanity checking
# ---------------------------------------------------------------------------
def reference_forward(x, mask, params, n_heads):
    B, S, D = x.shape
    d_k = D // n_heads

    def lin(t, w, b):
        return t @ w.T + b

    q = lin(x, params["W_q"], params["b_q"]).reshape(B, S, n_heads, d_k).transpose(0, 2, 1, 3)
    k = lin(x, params["W_k"], params["b_k"]).reshape(B, S, n_heads, d_k).transpose(0, 2, 1, 3)
    v = lin(x, params["W_v"], params["b_v"]).reshape(B, S, n_heads, d_k).transpose(0, 2, 1, 3)

    scores = jnp.einsum("bhqd,bhkd->bhqk", q, k) / math.sqrt(d_k)
    if mask is not None:
        m = mask
        if m.ndim == 2:
            m = m[:, None, None, :]
        elif m.ndim == 3:
            m = m[:, None, :, :]
        scores = jnp.where(m == 0, -10000.0, scores)
    attn = jax.nn.softmax(scores, axis=-1)
    ctx = jnp.einsum("bhqk,bhkd->bhqd", attn, v).transpose(0, 2, 1, 3).reshape(B, S, D)
    y = lin(ctx, params["W_o"], params["b_o"]) + x
    mean = jnp.mean(y, axis=-1, keepdims=True)
    var = jnp.mean((y - mean) ** 2, axis=-1, keepdims=True)
    yn = (y - mean) / jnp.sqrt(var + 1e-5)
    return yn * params["ln_gamma"] + params["ln_beta"], attn


def init_params(key, d_model):
    keys = jax.random.split(key, 8)
    scale = 0.02
    p = {}
    for i, name in enumerate(["q", "k", "v", "o"]):
        p[f"W_{name}"] = scale * jax.random.normal(keys[2 * i], (d_model, d_model),
                                                   dtype=jnp.float32)
        p[f"b_{name}"] = scale * jax.random.normal(keys[2 * i + 1], (d_model,),
                                                   dtype=jnp.float32)
    p["ln_gamma"] = jnp.ones((d_model,), dtype=jnp.float32)
    p["ln_beta"] = jnp.zeros((d_model,), dtype=jnp.float32)
    return p


if __name__ == "__main__":
    B, S, D, H = 2, 8, 32, 4

    key = jax.random.PRNGKey(0)
    k_x, k_p = jax.random.split(key)
    x = jax.random.normal(k_x, (B, S, D), dtype=jnp.float32)

    # Rank-1 key-padding mask [B, 1, 1, S]: batch 1 masks its last 2 key positions.
    mask = jnp.ones((B, 1, 1, S), dtype=jnp.float32)
    mask = mask.at[1, :, :, S - 2:].set(0.0)

    params = init_params(k_p, D)

    output, attn_weights = self_attention_forward(x, mask, params, H)
    output = jax.block_until_ready(output)
    attn_weights = jax.block_until_ready(attn_weights)

    assert output.shape == (B, S, D)
    assert attn_weights.shape == (B, H, S, S)
    # attention rows sum to 1 (exact softmax divide)
    assert jnp.allclose(jnp.sum(attn_weights, axis=-1), 1.0, atol=1e-3)
    # masked key positions get ~zero weight for batch 1
    assert float(jnp.max(attn_weights[1, :, :, S - 2:])) < 1e-3

    # compare against pure-JAX f32 reference (loose tolerance: bf16 MXU operands
    # and bf16 qkv/ctx intermediates)
    ref_out, ref_attn = reference_forward(x, mask, params, H)
    assert jnp.allclose(output, ref_out, atol=5e-2, rtol=5e-2)
    assert jnp.allclose(attn_weights, ref_attn, atol=2e-2)

    print("KERNEL_OK")
</pallas_src>

<mosaic_0001>
module attributes {stable_mosaic.version = 11 : i64} {
  func.func @linear_nt_kernel(%arg0: i32, %arg1: i32, %arg2: i32, %arg3: memref<16x32xf32, #tpu.memory_space<vmem>>, %arg4: memref<96x32xbf16, #tpu.memory_space<vmem>>, %arg5: memref<1x96xf32, #tpu.memory_space<vmem>>, %arg6: memref<16x96xbf16, #tpu.memory_space<vmem>>, %arg7: memref<16x96xf32, #tpu.memory_space<vmem>>) attributes {dimension_semantics = [#tpu.dimension_semantics<parallel>, #tpu.dimension_semantics<parallel>, #tpu.dimension_semantics<arbitrary>], iteration_bounds = array<i64: 1, 1, 1>, scalar_prefetch = 0 : i64, scratch_operands = 1 : i64, tpu.core_type = #tpu.core_type<tc>, window_params = [{transform_indices = @transform_0, window_bounds = array<i64: 16, 32>}, {transform_indices = @transform_1, window_bounds = array<i64: 96, 32>}, {transform_indices = @transform_2, window_bounds = array<i64: 1, 96>}, {transform_indices = @transform_3, window_bounds = array<i64: 16, 96>}]} {
    %c0_i32 = arith.constant 0 : i32
    %0 = arith.cmpi eq, %arg2, %c0_i32 : i32
    %1 = arith.extui %0 : i1 to i32
    %c0_i32_0 = arith.constant 0 : i32
    %2 = arith.cmpi ne, %1, %c0_i32_0 : i32
    scf.if %2 {
      %cst_10 = arith.constant 0.000000e+00 : f32
      %13 = vector.broadcast %cst_10 : f32 to vector<16x96xf32>
      %c0_11 = arith.constant 0 : index
      %c0_12 = arith.constant 0 : index
      %14 = vector.load %arg7[%c0_11, %c0_12] : memref<16x96xf32, #tpu.memory_space<vmem>>, vector<16x96xf32>
      tpu.vector_store %arg7[%c0_11, %c0_12], %13 {strides = array<i32>} : memref<16x96xf32, #tpu.memory_space<vmem>>, vector<16x96xf32>,
    } else {
    }
    %c0 = arith.constant 0 : index
    %c0_1 = arith.constant 0 : index
    %3 = vector.load %arg7[%c0, %c0_1] : memref<16x96xf32, #tpu.memory_space<vmem>>, vector<16x96xf32>
    %c0_2 = arith.constant 0 : index
    %c0_3 = arith.constant 0 : index
    %4 = vector.load %arg3[%c0_2, %c0_3] : memref<16x32xf32, #tpu.memory_space<vmem>>, vector<16x32xf32>
    %5 = arith.truncf %4 : vector<16x32xf32> to vector<16x32xbf16>
    %c0_4 = arith.constant 0 : index
    %c0_5 = arith.constant 0 : index
    %6 = vector.load %arg4[%c0_4, %c0_5] : memref<96x32xbf16, #tpu.memory_space<vmem>>, vector<96x32xbf16>
    %cst = arith.constant dense<0.000000e+00> : vector<16x96xf32>
    %7 = tpu.matmul %5, %6, %cst {dimension_numbers = #tpu.dot_dimension_numbers<[1], [1], [0], [0], [0, 0, 1, 0], [], []>} : vector<16x32xbf16>, vector<96x32xbf16>, vector<16x96xf32> -> vector<16x96xf32>
    %8 = arith.addf %3, %7 : vector<16x96xf32>
    %c0_6 = arith.constant 0 : index
    %c0_7 = arith.constant 0 : index
    %9 = vector.load %arg7[%c0_6, %c0_7] : memref<16x96xf32, #tpu.memory_space<vmem>>, vector<16x96xf32>
    tpu.vector_store %arg7[%c0_6, %c0_7], %8 {strides = array<i32>} : memref<16x96xf32, #tpu.memory_space<vmem>>, vector<16x96xf32>,
    %c0_i32_8 = arith.constant 0 : i32
    %10 = arith.cmpi eq, %arg2, %c0_i32_8 : i32
    %11 = arith.extui %10 : i1 to i32
    %c0_i32_9 = arith.constant 0 : i32
    %12 = arith.cmpi ne, %11, %c0_i32_9 : i32
    scf.if %12 {
      %c0_10 = arith.constant 0 : index
      %c0_11 = arith.constant 0 : index
      %13 = vector.load %arg7[%c0_10, %c0_11] : memref<16x96xf32, #tpu.memory_space<vmem>>, vector<16x96xf32>
      %c0_12 = arith.constant 0 : index
      %c0_13 = arith.constant 0 : index
      %14 = vector.load %arg5[%c0_12, %c0_13] : memref<1x96xf32, #tpu.memory_space<vmem>>, vector<1x96xf32>
      %15 = vector.broadcast %14 : vector<1x96xf32> to vector<16x96xf32>
      %16 = arith.addf %13, %15 : vector<16x96xf32>
      %17 = arith.truncf %16 : vector<16x96xf32> to vector<16x96xbf16>
      %c0_14 = arith.constant 0 : index
      %c0_15 = arith.constant 0 : index
      %18 = vector.load %arg6[%c0_14, %c0_15] : memref<16x96xbf16, #tpu.memory_space<vmem>>, vector<16x96xbf16>
      tpu.vector_store %arg6[%c0_14, %c0_15], %17 {strides = array<i32>} : memref<16x96xbf16, #tpu.memory_space<vmem>>, vector<16x96xbf16>,
    } else {
    }
    return
  }
  func.func @transform_0(%arg0: i32, %arg1: i32, %arg2: i32) -> (i32, i32) {
    %c0_i32 = arith.constant 0 : i32
    return %arg0, %arg2 : i32, i32
  }
  func.func @transform_1(%arg0: i32, %arg1: i32, %arg2: i32) -> (i32, i32) {
    %c0_i32 = arith.constant 0 : i32
    return %arg1, %arg2 : i32, i32
  }
  func.func @transform_2(%arg0: i32, %arg1: i32, %arg2: i32) -> (i32, i32) {
    %c0_i32 = arith.constant 0 : i32
    %c0_i32_0 = arith.constant 0 : i32
    return %c0_i32, %arg1 : i32, i32
  }
  func.func @transform_3(%arg0: i32, %arg1: i32, %arg2: i32) -> (i32, i32) {
    %c0_i32 = arith.constant 0 : i32
    return %arg0, %arg1 : i32, i32
  }
}

</mosaic_0001>

<bundles_post_ra>
// kernel: tpu_custom_call.1
= control target key start
LH: loop header
LB: loop body
LE: loop exit
PB: predicated region body
PF: predicated region fallthrough
CT: control target
= control target key end

     0   :  { %v249_v1 = vmov 0.0   ;;  %vm70_vm0 = vcmask 261120   ;;  %vm20_vm1 = vcmask 785408   ;;  %vm250_vm2 = vmmov 0   ;;  %s324_s0 = inlined_call_operand.vmem [shape: f32[16,32], index: 0, kind: input, shape index: {}]   ;;  %s325_s1 = inlined_call_operand.vmem [shape: bf16[96,32], index: 1, kind: input, shape index: {}]   ;;  %s326_s2 = inlined_call_operand.vmem [shape: f32[1,96], index: 2, kind: input, shape index: {}]   ;;  %s327_s3 = inlined_call_operand.hbm [shape: bf16[16,96], index: 3, kind: output, shape index: {}]  }
   0x1   :  { %v219_v0 = vld [vmem:[%s325_s1] sm:$0xff]   ;;  %198 = vmatprep.subr.bf16.mxu0 %v249_v1  ;;  %v220_v3 = vld [vmem:[%s325_s1 + $0x8] sm:$0xff]   ;;  %210 = vmatprep.mubr.msk.bf16.mxu0 %vm250_vm2, %v249_v1  ;;  %21 = vst.msk [vmem:[#allocation2] sm:$0xff] %vm20_vm1, %v249_v1  ;;  %22 = vst.msk [vmem:[#allocation2 + $0x8] sm:$0xff] %vm20_vm1, %v249_v1 }
   0x2   :  { %v75_v2 = vsel %vm70_vm0, %v219_v0, 0 }
   0x3   :  { %199 = vmatpush3.bf16.xpose.msra.mxu0 %v75_v2 }
   0x4   :  { %200 = vmatprep.subr.bf16.mxu0 %v249_v1 }
   0x5   :  { %8 = vsyncpa [#allocation4], 0  ;;  %v78_v4 = vsel %vm70_vm0, %v220_v3, 0  ;;  %v221_v5 = vld [vmem:[%s325_s1 + $0x10] sm:$0xff]   ;;  %v222_v7 = vld [vmem:[%s325_s1 + $0x18] sm:$0xff]   ;;  %vm160_vm3 = vcmask 781312  }
   0x6   :  { %v81_v6 = vsel %vm70_vm0, %v221_v5, 0  ;;  %v84_v8 = vsel %vm70_vm0, %v222_v7, 0  ;;  %v223_v9 = vld [vmem:[%s325_s1 + $0x20] sm:$0xff]   ;;  %v224_v11 = vld [vmem:[%s325_s1 + $0x28] sm:$0xff]  }
   0x7   :  { %v87_v10 = vsel %vm70_vm0, %v223_v9, 0  ;;  %v90_v12 = vsel %vm70_vm0, %v224_v11, 0  ;;  %v25_v13 = vld [vmem:[%s324_s0] sm:$0xff]  ;;  %v26_v14 = vld [vmem:[%s324_s0 + $0x8] sm:$0xff]  ;;  %s251_s0 = smov [#allocation3]  }
   0x8   :  { %v27_v15 = vpack.c.bf16 %v26_v14, %v25_v13  ;;  %v23_v16 = vld [vmem:[#allocation2] sm:$0xff]  ;;  %v24_v18 = vld [vmem:[#allocation2 + $0x8] sm:$0xff]  ;;  %s168_s29 = sshll.u32 %s251_s0, 4  ;;  %s169_s29 = int_to_ptr.vmem [resolvable:$true] %s168_s29 }
   0x9   :  { %v186_v24 = vld [vmem:[%s326_s2] ss:$0 sm:$0xff]  ;;  %s225_s30 = scalar_lea.vmem %s169_s29, 128  ;;  %p230_p1 = scmp.lt.s32.totalorder %s169_s29, %s169_s29 }
   0xa   :  { %p226_p0 = scmp.ne.s32.totalorder %s169_s29, %s225_s30  ;;  %p231_p2 = scmp.lt.s32.totalorder %s225_s30, %s225_s30 }
   0xb   :  { %201 = vmatpush3.bf16.xpose.msra.mxu0 %v78_v4 }
   0xc   :  { %202 = vmatprep.subr.bf16.mxu0 %v249_v1  ;;  %p232_p3 = por %p231_p2, %p230_p1 }
   0xe   :  { %p233_p4 = pnand %p232_p3, %p226_p0 }
  0x13   :  { %203 = vmatpush3.bf16.xpose.msra.mxu0 %v81_v6 }
  0x14   :  { %204 = vmatprep.subr.bf16.mxu0 %v249_v1 }
  0x1b   :  { %205 = vmatpush3.bf16.xpose.msra.mxu0 %v84_v8 }
  0x1c   :  { %206 = vmatprep.subr.bf16.mxu0 %v249_v1 }
  0x23   :  { %207 = vmatpush3.bf16.xpose.msra.mxu0 %v87_v10 }
  0x24   :  { %208 = vmatprep.subr.bf16.mxu0 %v249_v1 }
  0x2b   :  { %209 = vmatpush3.bf16.xpose.msra.mxu0 %v90_v12 }
  0x32   :  { %211 = vmatmul.mubr.msk.bf16.vlgmr.msra.gmra.mrb[0].mxu0 %vm70_vm0, %v27_v15 }
 0x105   :  { %v126_v17 = vpop.f32.mrb[0].mxu0 }
 0x106   :  { %v133_v19 = vadd.f32 %v126_v17, %v23_v16  ;;  %v212_v20 = vpop.f32.mrb[1].mxu0 }
 0x107   :  { %v129_v21 = vpop.f32.mrb[2].mxu0 }
 0x108   :  { %136 = vst.msk [vmem:[#allocation2] sm:$0xff] %vm20_vm1, %v133_v19  ;;  %v134_v22 = vadd.f32 %v129_v21, %v24_v18  ;;  %v213_v23 = vpop.f32.mrb[3].mxu0 }
 0x10a   :  { %137 = vst.msk [vmem:[#allocation2 + $0x8] sm:$0xff] %vm20_vm1, %v134_v22 }
 0x10f   :  { %v141_v25 = vld [vmem:[#allocation2] sm:$0xff] }
 0x110   :  { %v150_v26 = vadd.f32 %v186_v24, %v141_v25 }
 0x111   :  { %v142_v27 = vld [vmem:[#allocation2 + $0x8] sm:$0xff] }
 0x112   :  { %v151_v28 = vadd.f32 %v186_v24, %v142_v27  ;;  %v189_v29 = vpack.c.bf16 %v150_v26, %v150_v26 }
 0x114   :  { %v190_v30 = vpack.c.bf16 %v151_v28, %v151_v28  ;;  %161 = vst.msk [vmem:[#allocation3] sm:$0xf] %vm160_vm3, %v189_v29 }
 0x116   :  { %162 = vst.msk [vmem:[#allocation3 + $0x4] sm:$0xf] %vm160_vm3, %v190_v30 }
 0x117   :  { %236 = shalt.err (!%p233_p4)
}
 0x118   :  { %s237_s5 = scalar_lea.hbm %s327_s3, 128 }
 0x119   :  { %p238_p5 = scmp.ne.s32.totalorder %s327_s3, %s237_s5  ;;  %p241_p6 = scmp.lt.u32.totalorder %s237_s5, %s327_s3 }
 0x11b   :  { %p243_p7 = pnand %p241_p6, %p238_p5 }
 0x11d   :  { %246 = shalt.err (!%p243_p7)
}
 0x11e   :  { %s252_s10 = smov 64   ;;  %s253_s11 = smov 4  }
 0x11f   :  { %174 = dma.vmem_to_hbm [thread:$0]  %s169_s29, 128, %s327_s3, [#allocation4], %s252_s10, %s252_s10, %s253_s11  }
 0x120   :  { %247 = dma.done.wait [#allocation4], 128  }
 0x121   :  { %248 = vsyncadd [#allocation4], 4294967168 }
 0x122   :  { %178 = vsyncpa [#allocation4], 1 }

</bundles_post_ra>
